<compile_context>
chip_gen: v7x
topology: tpu7x:2x2x1
jax: 0.10.0
libtpu: 0.0.40
codegen_flags: <defaults>
</compile_context>

<pallas_src>
import functools

import jax
import jax.numpy as jnp
from jax.experimental import pallas as pl
from jax.experimental.pallas import tpu as pltpu

LN_EPS = 1e-5  # PyTorch nn.LayerNorm default
_LANE = 128
_SUBLANE = 8


def _round_up(n, m):
    return ((n + m - 1) // m) * m


def _sublane_multiple(dtype):
    # 8 rows for 4-byte, 16 for 2-byte (bf16), 32 for 1-byte (int8/fp8).
    return max(_SUBLANE, 32 // jnp.dtype(dtype).itemsize)


def _vmem_limit_bytes():
    # Per-generation VMEM budget with ~1/8 headroom for Mosaic internal
    # scratch: ~56 MiB on v7x (64 MiB/TC), ~112 MiB on v5e/v6e (128 MiB).
    cap = 64 * 1024 * 1024
    try:
        cap = int(pltpu.get_tpu_info().vmem_capacity_bytes)
    except Exception:
        pass
    budget = cap - cap // 8
    return max(32 * 1024 * 1024, min(budget, 112 * 1024 * 1024))


def _pick_tile_m(M, tile_m, sub):
    tm = max(sub, min(_round_up(tile_m, sub), _round_up(M, sub)))
    # >= 4 grid steps when M allows: both v7x TensorCores get >= 2 steps each
    # of the "parallel" axis, and the x/out tile pipeline actually overlaps.
    tm = min(tm, max(sub, _round_up(pl.cdiv(M, 4), sub)))
    # Prefer a tile that divides M exactly (skips the wrapper-side token pad
    # and the output row slice — each a full extra HBM pass) as long as it
    # stays within 2x of the target tile size.
    if M % sub == 0:
        t = tm
        while t >= max(sub, tm // 2):
            if M % t == 0:
                return t
            t -= sub
    return tm


def _pick_w2_block_k(d_in_p, d_out_p, mxu_itemsize, vmem_limit, w2_block_k):
    if w2_block_k is not None:
        tk = max(_LANE, (min(w2_block_k, d_out_p) // _LANE) * _LANE)
        while d_out_p % tk:
            tk -= _LANE
        return tk
    resident = (d_in_p + d_out_p) * d_out_p * mxu_itemsize
    if resident <= vmem_limit // 4:
        return d_out_p  # weights comfortably resident -> fused single-pass kernel
    for tk in (512, 384, 256, 128):
        if d_out_p % tk == 0:
            return tk
    return _LANE


def _layernorm_rows(y, p_ref, d_out_real):
    """LayerNorm of y:(tm, d_out_p) f32 whose padded lanes are exactly zero.

    Packed-param rows: 2=gamma, 3=beta, 4=lane mask (1.0 on real features)."""
    d_out_p = y.shape[-1]
    inv_d = jnp.float32(1.0 / d_out_real)
    mean = jnp.sum(y, axis=-1, keepdims=True) * inv_d            # XLU reduce
    cent = y - mean
    if d_out_real != d_out_p:
        cent = cent * p_ref[4:5, :]          # (1, d) row mask, broadcast mul
    var = jnp.sum(cent * cent, axis=-1, keepdims=True) * inv_d   # XLU reduce
    y_n = cent * jax.lax.rsqrt(var + jnp.float32(LN_EPS))        # EUP rsqrt
    return y_n * p_ref[2:3, :] + p_ref[3:4, :]


def _ffn_ln_fused_kernel(x_ref, w1_ref, w2_ref, p_ref, o_ref, *, d_out_real):
    # 1x1 conv #1 == per-token linear (MXU, f32 accumulate) + bias + ReLU.
    h = jnp.dot(x_ref[...], w1_ref[...], preferred_element_type=jnp.float32)
    h = jnp.maximum(h + p_ref[0:1, :], 0.0)
    # 1x1 conv #2; keep the MXU operand in the weight dtype (bf16 stays bf16).
    y = jnp.dot(h.astype(w2_ref.dtype), w2_ref[...],
                preferred_element_type=jnp.float32) + p_ref[1:2, :]
    o_ref[...] = _layernorm_rows(y, p_ref, d_out_real).astype(o_ref.dtype)


def _ffn_ln_ksplit_kernel(x_ref, w1k_ref, b1k_ref, w2k_ref, p_ref, o_ref,
                          acc_ref, *, d_out_real):
    k = pl.program_id(1)

    @pl.when(k == 0)
    def _init():
        acc_ref[...] = jnp.zeros_like(acc_ref)

    # Column chunk of conv #1: (tm, tk) = relu(x @ W1[:, chunk] + b1[chunk]).
    h_k = jnp.dot(x_ref[...], w1k_ref[...], preferred_element_type=jnp.float32)
    h_k = jnp.maximum(h_k + b1k_ref[...], 0.0)
    # Matching row chunk of conv #2, f32 accumulation across the k axis.
    acc_ref[...] += jnp.dot(h_k.astype(w2k_ref.dtype), w2k_ref[...],
                            preferred_element_type=jnp.float32)

    @pl.when(k == pl.num_programs(1) - 1)
    def _epilogue():
        y = acc_ref[...] + p_ref[1:2, :]
        o_ref[...] = _layernorm_rows(y, p_ref, d_out_real).astype(o_ref.dtype)


@functools.partial(
    jax.jit,
    static_argnames=("tile_m", "w2_block_k", "mxu_dtype", "single_buffer_weights"))
def ffn_compressed_forward(x, w1, b1, w2, b2, gamma, beta, *, tile_m=None,
                           w2_block_k=None, mxu_dtype=None,
                           single_buffer_weights=True):
    """x: (B, L, d_in) -> (B, L, d_out).

    tile_m: token-tile rows (None -> 1024 on 128 MiB-VMEM chips, 512 on v7x;
    worth sweeping 256/512/1024). w2_block_k: force the K-split path with this
    chunk size (auto-enabled for large weights). mxu_dtype: matmul operand
    dtype (default: x.dtype; pass jnp.bfloat16 to force fast-MXU bf16)."""
    B, L, d_in = x.shape
    d_out = w1.shape[1]
    M = B * L
    out_dtype = x.dtype

    if mxu_dtype is None:
        mxu_dtype = x.dtype            # bf16 inputs -> bf16 MXU operands
    mxu_dtype = jnp.dtype(mxu_dtype)

    # Lane-dense feature padding (multiples of 128 -> unmasked vst, full vregs).
    d_in_p = _round_up(d_in, _LANE)
    d_out_p = _round_up(d_out, _LANE)

    vmem_limit = _vmem_limit_bytes()
    if tile_m is None:
        tile_m = 1024 if vmem_limit >= 96 * 1024 * 1024 else 512

    sub = _sublane_multiple(mxu_dtype)
    tm = _pick_tile_m(M, tile_m, sub)
    M_p = _round_up(M, tm)
    n_m = M_p // tm

    tk = _pick_w2_block_k(d_in_p, d_out_p, mxu_dtype.itemsize, vmem_limit,
                          w2_block_k)
    use_ksplit = tk < d_out_p

    # --- operand prep (wrapper side) -------------------------------------
    x2d = x.reshape(M, d_in).astype(mxu_dtype)
    if M_p != M or d_in_p != d_in:
        x2d = jnp.pad(x2d, ((0, M_p - M), (0, d_in_p - d_in)))
    w1_p = jnp.pad(w1, ((0, d_in_p - d_in), (0, d_out_p - d_out))).astype(mxu_dtype)
    w2_p = jnp.pad(w2, ((0, d_out_p - d_out), (0, d_out_p - d_out))).astype(mxu_dtype)

    def _row(v):
        return jnp.pad(v.astype(jnp.float32), (0, d_out_p - d_out))

    lane_mask = (jnp.arange(d_out_p) < d_out).astype(jnp.float32)
    # Packed params: rows [b1, b2, gamma, beta, lane_mask, 0, 0, 0] (f32).
    params = jnp.pad(jnp.stack([_row(b1), _row(b2), _row(gamma), _row(beta),
                                lane_mask], axis=0), ((0, 3), (0, 0)))

    def const_spec(shape):
        if single_buffer_weights:
            return pl.BlockSpec(shape, lambda *_: (0,) * len(shape),
                                pipeline_mode=pl.Buffered(1))
        return pl.BlockSpec(shape, lambda *_: (0,) * len(shape))

    # --- pallas_call ------------------------------------------------------
    if not use_ksplit:
        kernel = functools.partial(_ffn_ln_fused_kernel, d_out_real=d_out)
        grid_spec = pltpu.PrefetchScalarGridSpec(
            num_scalar_prefetch=0,
            grid=(n_m,),
            in_specs=[
                pl.BlockSpec((tm, d_in_p), lambda i: (i, 0)),       # x tile
                const_spec((d_in_p, d_out_p)),                      # W1 resident
                const_spec((d_out_p, d_out_p)),                     # W2 resident
                const_spec((8, d_out_p)),                           # packed params
            ],
            out_specs=pl.BlockSpec((tm, d_out_p), lambda i: (i, 0)))
        dim_sem = ("parallel",)
        args = (x2d, w1_p, w2_p, params)
        scratch = ()
    else:
        n_k = d_out_p // tk
        b1_2d = _row(b1).reshape(1, d_out_p)
        kernel = functools.partial(_ffn_ln_ksplit_kernel, d_out_real=d_out)
        grid_spec = pltpu.PrefetchScalarGridSpec(
            num_scalar_prefetch=0,
            grid=(n_m, n_k),
            in_specs=[
                pl.BlockSpec((tm, d_in_p), lambda i, k: (i, 0)),    # x (resident over k)
                pl.BlockSpec((d_in_p, tk), lambda i, k: (0, k)),    # W1 column chunk
                pl.BlockSpec((1, tk), lambda i, k: (0, k)),         # b1 chunk
                pl.BlockSpec((tk, d_out_p), lambda i, k: (k, 0)),   # W2 row chunk
                const_spec((8, d_out_p)),                           # packed params
            ],
            out_specs=pl.BlockSpec((tm, d_out_p), lambda i, k: (i, 0)),
            scratch_shapes=[pltpu.VMEM((tm, d_out_p), jnp.float32)])
        dim_sem = ("parallel", "arbitrary")
        args = (x2d, w1_p, b1_2d, w2_p, params)
        scratch = None  # handled by grid_spec

    out = pl.pallas_call(
        kernel,
        out_shape=jax.ShapeDtypeStruct((M_p, d_out_p), out_dtype),
        grid_spec=grid_spec,
        compiler_params=pltpu.CompilerParams(
            dimension_semantics=dim_sem,
            vmem_limit_bytes=vmem_limit),
    )(*args)

    if M_p != M or d_out_p != d_out:
        out = out[:M, :d_out]
    return out.reshape(B, L, d_out)


def init_params(key, d_in, d_out):
    """Deterministic synthetic parameters.
    PyTorch Conv1d weight is (out, in, 1); we store the transposed (in, out)
    matrices so the kernel can do x @ W directly."""
    k1, k2, k3, k4 = jax.random.split(key, 4)
    scale1 = 1.0 / jnp.sqrt(d_in)
    scale2 = 1.0 / jnp.sqrt(d_out)
    w1 = jax.random.uniform(k1, (d_in, d_out), jnp.float32, -scale1, scale1)
    b1 = jax.random.uniform(k2, (d_out,), jnp.float32, -scale1, scale1)
    w2 = jax.random.uniform(k3, (d_out, d_out), jnp.float32, -scale2, scale2)
    b2 = jax.random.uniform(k4, (d_out,), jnp.float32, -scale2, scale2)
    gamma = jnp.ones((d_out,), jnp.float32)
    beta = jnp.zeros((d_out,), jnp.float32)
    return w1, b1, w2, b2, gamma, beta


def _reference(x, w1, b1, w2, b2, gamma, beta):
    h = jnp.maximum(x @ w1 + b1, 0.0)
    y = h @ w2 + b2
    mean = jnp.mean(y, axis=-1, keepdims=True)
    var = jnp.mean((y - mean) ** 2, axis=-1, keepdims=True)
    return (y - mean) / jnp.sqrt(var + LN_EPS) * gamma + beta


def _run(x, params, **kwargs):
    try:
        return jax.block_until_ready(ffn_compressed_forward(x, *params, **kwargs))
    except Exception:
        # TODO(synk): fall back to default double-buffered weight specs if this
        # jax build rejects pl.Buffered(1) on the main pallas_call pipeline.
        kwargs = dict(kwargs, single_buffer_weights=False)
        return jax.block_until_ready(ffn_compressed_forward(x, *params, **kwargs))


if __name__ == "__main__":
    key = jax.random.PRNGKey(0)
    kx, kp, kx2, kp2 = jax.random.split(key, 4)

    # Primary check: small module shapes, fused single-pass kernel path.
    B, L, d_in, d_out = 2, 8, 32, 32  # d_hid of the module is unused by forward
    x = jax.random.normal(kx, (B, L, d_in), jnp.float32)
    params = init_params(kp, d_in, d_out)

    out = _run(x, params)
    ref = _reference(x, *params)
    assert out.shape == (B, L, d_out)
    assert jnp.allclose(out, ref, atol=1e-4, rtol=1e-4), "mismatch vs reference"

    # Secondary check: exercise the K-split path (streamed W1/W2 chunks, f32
    # accumulator scratch, LayerNorm epilogue) by forcing a 128-wide K chunk.
    d2 = 256
    x2 = jax.random.normal(kx2, (2, 32, d2), jnp.float32)
    params2 = init_params(kp2, d2, d2)
    out2 = _run(x2, params2, w2_block_k=128)
    ref2 = _reference(x2, *params2)
    assert out2.shape == (2, 32, d2)
    assert jnp.allclose(out2, ref2, atol=2e-4, rtol=2e-4), "ksplit mismatch"

    print("KERNEL_OK")
</pallas_src>

<mosaic_0001>
module attributes {stable_mosaic.version = 11 : i64} {
  func.func @_ffn_ln_fused_kernel(%arg0: i32, %arg1: memref<8x128xf32, #tpu.memory_space<vmem>>, %arg2: memref<128x128xf32, #tpu.memory_space<vmem>>, %arg3: memref<128x128xf32, #tpu.memory_space<vmem>>, %arg4: memref<8x128xf32, #tpu.memory_space<vmem>>, %arg5: memref<8x128xf32, #tpu.memory_space<vmem>>) attributes {dimension_semantics = [#tpu.dimension_semantics<parallel>], iteration_bounds = array<i64: 2>, scalar_prefetch = 0 : i64, scratch_operands = 0 : i64, tpu.core_type = #tpu.core_type<tc>, window_params = [{transform_indices = @transform_0, window_bounds = array<i64: 8, 128>}, {pipeline_mode = #tpu.pipeline_mode<synchronous>, transform_indices = @transform_1, window_bounds = array<i64: 128, 128>}, {pipeline_mode = #tpu.pipeline_mode<synchronous>, transform_indices = @transform_2, window_bounds = array<i64: 128, 128>}, {pipeline_mode = #tpu.pipeline_mode<synchronous>, transform_indices = @transform_3, window_bounds = array<i64: 8, 128>}, {transform_indices = @transform_4, window_bounds = array<i64: 8, 128>}]} {
    %c0 = arith.constant 0 : index
    %c0_0 = arith.constant 0 : index
    %0 = vector.load %arg1[%c0, %c0_0] : memref<8x128xf32, #tpu.memory_space<vmem>>, vector<8x128xf32>
    %c0_1 = arith.constant 0 : index
    %c0_2 = arith.constant 0 : index
    %1 = vector.load %arg2[%c0_1, %c0_2] : memref<128x128xf32, #tpu.memory_space<vmem>>, vector<128x128xf32>
    %cst = arith.constant dense<0.000000e+00> : vector<8x128xf32>
    %2 = tpu.matmul %0, %1, %cst {dimension_numbers = #tpu.dot_dimension_numbers<[1], [0], [0], [1], [0, 0, 1, 1], [], []>} : vector<8x128xf32>, vector<128x128xf32>, vector<8x128xf32> -> vector<8x128xf32>
    %c0_3 = arith.constant 0 : index
    %c0_4 = arith.constant 0 : index
    %3 = vector.load %arg4[%c0_3, %c0_4] : memref<8x128xf32, #tpu.memory_space<vmem>>, vector<1x128xf32>
    %4 = vector.broadcast %3 : vector<1x128xf32> to vector<8x128xf32>
    %5 = arith.addf %2, %4 : vector<8x128xf32>
    %cst_5 = arith.constant 0.000000e+00 : f32
    %6 = vector.broadcast %cst_5 : f32 to vector<8x128xf32>
    %7 = arith.maximumf %5, %6 : vector<8x128xf32>
    %c0_6 = arith.constant 0 : index
    %c0_7 = arith.constant 0 : index
    %8 = vector.load %arg3[%c0_6, %c0_7] : memref<128x128xf32, #tpu.memory_space<vmem>>, vector<128x128xf32>
    %cst_8 = arith.constant dense<0.000000e+00> : vector<8x128xf32>
    %9 = tpu.matmul %7, %8, %cst_8 {dimension_numbers = #tpu.dot_dimension_numbers<[1], [0], [0], [1], [0, 0, 1, 1], [], []>} : vector<8x128xf32>, vector<128x128xf32>, vector<8x128xf32> -> vector<8x128xf32>
    %c1 = arith.constant 1 : index
    %c0_9 = arith.constant 0 : index
    %10 = vector.load %arg4[%c1, %c0_9] : memref<8x128xf32, #tpu.memory_space<vmem>>, vector<1x128xf32>
    %11 = vector.broadcast %10 : vector<1x128xf32> to vector<8x128xf32>
    %12 = arith.addf %9, %11 : vector<8x128xf32>
    %cst_10 = arith.constant dense<0.000000e+00> : vector<8xf32>
    %13 = vector.multi_reduction <add>, %12, %cst_10 [1] : vector<8x128xf32> to vector<8xf32>
    %14 = vector.shape_cast %13 : vector<8xf32> to vector<8x1xf32>
    %cst_11 = arith.constant 3.125000e-02 : f32
    %15 = vector.broadcast %cst_11 : f32 to vector<8x1xf32>
    %16 = arith.mulf %14, %15 : vector<8x1xf32>
    %17 = vector.broadcast %16 : vector<8x1xf32> to vector<8x128xf32>
    %18 = arith.subf %12, %17 : vector<8x128xf32>
    %c4 = arith.constant 4 : index
    %c0_12 = arith.constant 0 : index
    %19 = vector.load %arg4[%c4, %c0_12] : memref<8x128xf32, #tpu.memory_space<vmem>>, vector<1x128xf32>
    %20 = vector.broadcast %19 : vector<1x128xf32> to vector<8x128xf32>
    %21 = arith.mulf %18, %20 : vector<8x128xf32>
    %22 = arith.mulf %21, %21 : vector<8x128xf32>
    %cst_13 = arith.constant dense<0.000000e+00> : vector<8xf32>
    %23 = vector.multi_reduction <add>, %22, %cst_13 [1] : vector<8x128xf32> to vector<8xf32>
    %24 = vector.shape_cast %23 : vector<8xf32> to vector<8x1xf32>
    %cst_14 = arith.constant 3.125000e-02 : f32
    %25 = vector.broadcast %cst_14 : f32 to vector<8x1xf32>
    %26 = arith.mulf %24, %25 : vector<8x1xf32>
    %cst_15 = arith.constant 9.99999974E-6 : f32
    %27 = vector.broadcast %cst_15 : f32 to vector<8x1xf32>
    %28 = arith.addf %26, %27 : vector<8x1xf32>
    %29 = math.rsqrt %28 : vector<8x1xf32>
    %30 = vector.broadcast %29 : vector<8x1xf32> to vector<8x128xf32>
    %31 = arith.mulf %21, %30 : vector<8x128xf32>
    %c2 = arith.constant 2 : index
    %c0_16 = arith.constant 0 : index
    %32 = vector.load %arg4[%c2, %c0_16] : memref<8x128xf32, #tpu.memory_space<vmem>>, vector<1x128xf32>
    %33 = vector.broadcast %32 : vector<1x128xf32> to vector<8x128xf32>
    %34 = arith.mulf %31, %33 : vector<8x128xf32>
    %c3 = arith.constant 3 : index
    %c0_17 = arith.constant 0 : index
    %35 = vector.load %arg4[%c3, %c0_17] : memref<8x128xf32, #tpu.memory_space<vmem>>, vector<1x128xf32>
    %36 = vector.broadcast %35 : vector<1x128xf32> to vector<8x128xf32>
    %37 = arith.addf %34, %36 : vector<8x128xf32>
    %c0_18 = arith.constant 0 : index
    %c0_19 = arith.constant 0 : index
    %38 = vector.load %arg5[%c0_18, %c0_19] : memref<8x128xf32, #tpu.memory_space<vmem>>, vector<8x128xf32>
    tpu.vector_store %arg5[%c0_18, %c0_19], %37 {strides = array<i32>} : memref<8x128xf32, #tpu.memory_space<vmem>>, vector<8x128xf32>,
    return
  }
  func.func @transform_0(%arg0: i32) -> (i32, i32) {
    %c0_i32 = arith.constant 0 : i32
    %c0_i32_0 = arith.constant 0 : i32
    return %arg0, %c0_i32 : i32, i32
  }
  func.func @transform_1(%arg0: i32) -> (i32, i32) {
    %c0_i32 = arith.constant 0 : i32
    %c0_i32_0 = arith.constant 0 : i32
    %c0_i32_1 = arith.constant 0 : i32
    return %c0_i32, %c0_i32_0 : i32, i32
  }
  func.func @transform_2(%arg0: i32) -> (i32, i32) {
    %c0_i32 = arith.constant 0 : i32
    %c0_i32_0 = arith.constant 0 : i32
    %c0_i32_1 = arith.constant 0 : i32
    return %c0_i32, %c0_i32_0 : i32, i32
  }
  func.func @transform_3(%arg0: i32) -> (i32, i32) {
    %c0_i32 = arith.constant 0 : i32
    %c0_i32_0 = arith.constant 0 : i32
    %c0_i32_1 = arith.constant 0 : i32
    return %c0_i32, %c0_i32_0 : i32, i32
  }
  func.func @transform_4(%arg0: i32) -> (i32, i32) {
    %c0_i32 = arith.constant 0 : i32
    %c0_i32_0 = arith.constant 0 : i32
    return %arg0, %c0_i32 : i32, i32
  }
}

module attributes {stable_mosaic.version = 11 : i64} {
  func.func @_ffn_ln_fused_kernel(%arg0: i32, %arg1: memref<8x128xf32, #tpu.memory_space<vmem>>, %arg2: memref<128x128xf32, #tpu.memory_space<vmem>>, %arg3: memref<128x128xf32, #tpu.memory_space<vmem>>, %arg4: memref<8x128xf32, #tpu.memory_space<vmem>>, %arg5: memref<8x128xf32, #tpu.memory_space<vmem>>) attributes {dimension_semantics = [#tpu.dimension_semantics<parallel>], iteration_bounds = array<i64: 2>, scalar_prefetch = 0 : i64, scratch_operands = 0 : i64, tpu.core_type = #tpu.core_type<tc>, window_params = [{transform_indices = @transform_0, window_bounds = array<i64: 8, 128>}, {pipeline_mode = #tpu.pipeline_mode<synchronous>, transform_indices = @transform_1, window_bounds = array<i64: 128, 128>}, {pipeline_mode = #tpu.pipeline_mode<synchronous>, transform_indices = @transform_2, window_bounds = array<i64: 128, 128>}, {pipeline_mode = #tpu.pipeline_mode<synchronous>, transform_indices = @transform_3, window_bounds = array<i64: 8, 128>}, {transform_indices = @transform_4, window_bounds = array<i64: 8, 128>}]} {
    %c0 = arith.constant 0 : index
    %c0_0 = arith.constant 0 : index
    %0 = vector.load %arg1[%c0, %c0_0] : memref<8x128xf32, #tpu.memory_space<vmem>>, vector<8x128xf32>
    %c0_1 = arith.constant 0 : index
    %c0_2 = arith.constant 0 : index
    %1 = vector.load %arg2[%c0_1, %c0_2] : memref<128x128xf32, #tpu.memory_space<vmem>>, vector<128x128xf32>
    %cst = arith.constant dense<0.000000e+00> : vector<8x128xf32>
    %2 = tpu.matmul %0, %1, %cst {dimension_numbers = #tpu.dot_dimension_numbers<[1], [0], [0], [1], [0, 0, 1, 1], [], []>} : vector<8x128xf32>, vector<128x128xf32>, vector<8x128xf32> -> vector<8x128xf32>
    %c0_3 = arith.constant 0 : index
    %c0_4 = arith.constant 0 : index
    %3 = vector.load %arg4[%c0_3, %c0_4] : memref<8x128xf32, #tpu.memory_space<vmem>>, vector<1x128xf32>
    %4 = vector.broadcast %3 : vector<1x128xf32> to vector<8x128xf32>
    %5 = arith.addf %2, %4 : vector<8x128xf32>
    %cst_5 = arith.constant 0.000000e+00 : f32
    %6 = vector.broadcast %cst_5 : f32 to vector<8x128xf32>
    %7 = arith.maximumf %5, %6 : vector<8x128xf32>
    %c0_6 = arith.constant 0 : index
    %c0_7 = arith.constant 0 : index
    %8 = vector.load %arg3[%c0_6, %c0_7] : memref<128x128xf32, #tpu.memory_space<vmem>>, vector<128x128xf32>
    %cst_8 = arith.constant dense<0.000000e+00> : vector<8x128xf32>
    %9 = tpu.matmul %7, %8, %cst_8 {dimension_numbers = #tpu.dot_dimension_numbers<[1], [0], [0], [1], [0, 0, 1, 1], [], []>} : vector<8x128xf32>, vector<128x128xf32>, vector<8x128xf32> -> vector<8x128xf32>
    %c1 = arith.constant 1 : index
    %c0_9 = arith.constant 0 : index
    %10 = vector.load %arg4[%c1, %c0_9] : memref<8x128xf32, #tpu.memory_space<vmem>>, vector<1x128xf32>
    %11 = vector.broadcast %10 : vector<1x128xf32> to vector<8x128xf32>
    %12 = arith.addf %9, %11 : vector<8x128xf32>
    %cst_10 = arith.constant dense<0.000000e+00> : vector<8xf32>
    %13 = vector.multi_reduction <add>, %12, %cst_10 [1] : vector<8x128xf32> to vector<8xf32>
    %14 = vector.shape_cast %13 : vector<8xf32> to vector<8x1xf32>
    %cst_11 = arith.constant 3.125000e-02 : f32
    %15 = vector.broadcast %cst_11 : f32 to vector<8x1xf32>
    %16 = arith.mulf %14, %15 : vector<8x1xf32>
    %17 = vector.broadcast %16 : vector<8x1xf32> to vector<8x128xf32>
    %18 = arith.subf %12, %17 : vector<8x128xf32>
    %c4 = arith.constant 4 : index
    %c0_12 = arith.constant 0 : index
    %19 = vector.load %arg4[%c4, %c0_12] : memref<8x128xf32, #tpu.memory_space<vmem>>, vector<1x128xf32>
    %20 = vector.broadcast %19 : vector<1x128xf32> to vector<8x128xf32>
    %21 = arith.mulf %18, %20 : vector<8x128xf32>
    %22 = arith.mulf %21, %21 : vector<8x128xf32>
    %cst_13 = arith.constant dense<0.000000e+00> : vector<8xf32>
    %23 = vector.multi_reduction <add>, %22, %cst_13 [1] : vector<8x128xf32> to vector<8xf32>
    %24 = vector.shape_cast %23 : vector<8xf32> to vector<8x1xf32>
    %cst_14 = arith.constant 3.125000e-02 : f32
    %25 = vector.broadcast %cst_14 : f32 to vector<8x1xf32>
    %26 = arith.mulf %24, %25 : vector<8x1xf32>
    %cst_15 = arith.constant 9.99999974E-6 : f32
    %27 = vector.broadcast %cst_15 : f32 to vector<8x1xf32>
    %28 = arith.addf %26, %27 : vector<8x1xf32>
    %29 = math.rsqrt %28 : vector<8x1xf32>
    %30 = vector.broadcast %29 : vector<8x1xf32> to vector<8x128xf32>
    %31 = arith.mulf %21, %30 : vector<8x128xf32>
    %c2 = arith.constant 2 : index
    %c0_16 = arith.constant 0 : index
    %32 = vector.load %arg4[%c2, %c0_16] : memref<8x128xf32, #tpu.memory_space<vmem>>, vector<1x128xf32>
    %33 = vector.broadcast %32 : vector<1x128xf32> to vector<8x128xf32>
    %34 = arith.mulf %31, %33 : vector<8x128xf32>
    %c3 = arith.constant 3 : index
    %c0_17 = arith.constant 0 : index
    %35 = vector.load %arg4[%c3, %c0_17] : memref<8x128xf32, #tpu.memory_space<vmem>>, vector<1x128xf32>
    %36 = vector.broadcast %35 : vector<1x128xf32> to vector<8x128xf32>
    %37 = arith.addf %34, %36 : vector<8x128xf32>
    %c0_18 = arith.constant 0 : index
    %c0_19 = arith.constant 0 : index
    %38 = vector.load %arg5[%c0_18, %c0_19] : memref<8x128xf32, #tpu.memory_space<vmem>>, vector<8x128xf32>
    tpu.vector_store %arg5[%c0_18, %c0_19], %37 {strides = array<i32>} : memref<8x128xf32, #tpu.memory_space<vmem>>, vector<8x128xf32>,
    return
  }
  func.func @transform_0(%arg0: i32) -> (i32, i32) {
    %c0_i32 = arith.constant 0 : i32
    %c0_i32_0 = arith.constant 0 : i32
    return %arg0, %c0_i32 : i32, i32
  }
  func.func @transform_1(%arg0: i32) -> (i32, i32) {
    %c0_i32 = arith.constant 0 : i32
    %c0_i32_0 = arith.constant 0 : i32
    %c0_i32_1 = arith.constant 0 : i32
    return %c0_i32, %c0_i32_0 : i32, i32
  }
  func.func @transform_2(%arg0: i32) -> (i32, i32) {
    %c0_i32 = arith.constant 0 : i32
    %c0_i32_0 = arith.constant 0 : i32
    %c0_i32_1 = arith.constant 0 : i32
    return %c0_i32, %c0_i32_0 : i32, i32
  }
  func.func @transform_3(%arg0: i32) -> (i32, i32) {
    %c0_i32 = arith.constant 0 : i32
    %c0_i32_0 = arith.constant 0 : i32
    %c0_i32_1 = arith.constant 0 : i32
    return %c0_i32, %c0_i32_0 : i32, i32
  }
  func.func @transform_4(%arg0: i32) -> (i32, i32) {
    %c0_i32 = arith.constant 0 : i32
    %c0_i32_0 = arith.constant 0 : i32
    return %arg0, %c0_i32 : i32, i32
  }
}

</mosaic_0001>

<bundles_post_ra>
// kernel: ffn_compressed_forward.1
= control target key start
LH: loop header
LB: loop body
LE: loop exit
PB: predicated region body
PF: predicated region fallthrough
CT: control target
= control target key end

     0   :  { %s675_s15 = smov 0   ;;  %s830_s0 = inlined_call_operand.vmem [shape: f32[16,128], index: 0, kind: input, shape index: {}]   ;;  %s831_s1 = inlined_call_operand.vmem [shape: f32[128,128], index: 1, kind: input, shape index: {}]   ;;  %s832_s2 = inlined_call_operand.vmem [shape: f32[128,128], index: 2, kind: input, shape index: {}]   ;;  %s833_s3 = inlined_call_operand.vmem [shape: f32[8,128], index: 3, kind: input, shape index: {}]   ;;  %s834_s4 = inlined_call_operand.vmem [shape: f32[16,128], index: 4, kind: output, shape index: {}]  }
   0x1 LB: > { %s460_s16 = sadd.s32 4294967295, %s645_s15   ;;  %p464_p0 = scmp.ge.s32.totalorder %s645_s15, 1  ;;  %s645_s15 = sphi %s675_s15, %s14_s15  }
   0x2   : > { %p161_p1 = scmp.lt.s32.totalorder %s645_s15, 3 }
   0x4   : > { %p162_p2 = pnand %p464_p0, %p161_p1 }
   0x5   : > { %v194_v0 = vld [vmem:[%s831_s1] sm:$0xff] (!%p162_p2)  ;;  %v195_v1 = vld [vmem:[%s831_s1 + $0x8] sm:$0xff] (!%p162_p2)  ;;  %v196_v2 = vld [vmem:[%s831_s1 + $0x10] sm:$0xff] (!%p162_p2)  ;;  %v647_v3 = vmov (!%p162_p2), 0.0|0.0   ;;  %vm648_vm0 = vmmov (!%p162_p2), 0   ;;  %v649_v6 = vmov (!%p162_p2), 0.0  }
   0x6   : > { %165 = sbr.rel (%p162_p2) target bundleno = 783 (0x30f), region = 36  ;;  %578 = vmatprep.subr.bf16.mxu0 (!%p162_p2), %v647_v3  ;;  %v579_v4 = vpack.c.bf16 (!%p162_p2), %v195_v1, %v194_v0  ;;  %v197_v5 = vld [vmem:[%s831_s1 + $0x18] sm:$0xff] (!%p162_p2)  ;;  %540 = vmatprep.mubr.msk.f32.mxu0 (!%p162_p2), %vm648_vm0, %v649_v6  ;;  %v198_v8 = vld [vmem:[%s831_s1 + $0x20] sm:$0xff] (!%p162_p2)  ;;  %v199_v9 = vld [vmem:[%s831_s1 + $0x28] sm:$0xff] (!%p162_p2)  ;;  %p185_p3 = scmp.lt.s32.totalorder (!%p162_p2), %s460_s16, 1 }
   0x7   : > { %602 = vmatprep.subr.bf16.mxu1 (!%p162_p2), %v647_v3  ;;  %575 = vmatprep.mubr.msk.f32.mxu1 (!%p162_p2), %vm648_vm0, %v649_v6  ;;  %v582_v7 = vpack.c.bf16 (!%p162_p2), %v197_v5, %v196_v2  ;;  %v286_v10 = vld [vmem:[%s832_s2] sm:$0xff] (!%p162_p2)  ;;  %v287_v11 = vld [vmem:[%s832_s2 + $0x8] sm:$0xff] (!%p162_p2)  ;;  %v288_v13 = vld [vmem:[%s832_s2 + $0x10] sm:$0xff] (!%p162_p2)  ;;  %v585_v15 = vpack.c.bf16 (!%p162_p2), %v199_v9, %v198_v8 }
   0x8   : > { %580 = vmatpush3.bf16.msra.mxu0 (!%p162_p2), %v579_v4  ;;  %v603_v12 = vpack.c.bf16 (!%p162_p2), %v287_v11, %v286_v10  ;;  %v289_v14 = vld [vmem:[%s832_s2 + $0x18] sm:$0xff] (!%p162_p2)  ;;  %v200_v16 = vld [vmem:[%s831_s1 + $0x30] sm:$0xff] (!%p162_p2)  ;;  %v290_v19 = vld [vmem:[%s832_s2 + $0x20] sm:$0xff] (!%p162_p2) }
   0x9   : > { %581 = vmatprep.subr.bf16.mxu0 (!%p162_p2), %v647_v3  ;;  %v201_v17 = vld [vmem:[%s831_s1 + $0x38] sm:$0xff] (!%p162_p2)  ;;  %v606_v18 = vpack.c.bf16 (!%p162_p2), %v289_v14, %v288_v13  ;;  %v291_v20 = vld [vmem:[%s832_s2 + $0x28] sm:$0xff] (!%p162_p2)  ;;  %v202_v22 = vld [vmem:[%s831_s1 + $0x40] sm:$0xff] (!%p162_p2) }
   0xa   : > { %604 = vmatpush3.bf16.msra.mxu1 (!%p162_p2), %v603_v12  ;;  %v588_v21 = vpack.c.bf16 (!%p162_p2), %v201_v17, %v200_v16  ;;  %v203_v23 = vld [vmem:[%s831_s1 + $0x48] sm:$0xff] (!%p162_p2)  ;;  %v609_v24 = vpack.c.bf16 (!%p162_p2), %v291_v20, %v290_v19  ;;  %v292_v25 = vld [vmem:[%s832_s2 + $0x30] sm:$0xff] (!%p162_p2)  ;;  %v293_v26 = vld [vmem:[%s832_s2 + $0x38] sm:$0xff] (!%p162_p2) }
   0xb   : > { %605 = vmatprep.subr.bf16.mxu1 (!%p162_p2), %v647_v3  ;;  %v591_v27 = vpack.c.bf16 (!%p162_p2), %v203_v23, %v202_v22  ;;  %v204_v28 = vld [vmem:[%s831_s1 + $0x50] sm:$0xff] (!%p162_p2)  ;;  %v205_v29 = vld [vmem:[%s831_s1 + $0x58] sm:$0xff] (!%p162_p2)  ;;  %v612_v30 = vpack.c.bf16 (!%p162_p2), %v293_v26, %v292_v25  ;;  %v294_v31 = vld [vmem:[%s832_s2 + $0x40] sm:$0xff] (!%p162_p2) }
   0xc   : > { %583 = vmatpush3.bf16.msra.mxu0 (!%p162_p2), %v582_v7  ;;  %v295_v32 = vld [vmem:[%s832_s2 + $0x48] sm:$0xff] (!%p162_p2)  ;;  %v594_v33 = vpack.c.bf16 (!%p162_p2), %v205_v29, %v204_v28  ;;  %v206_v34 = vld [vmem:[%s831_s1 + $0x60] sm:$0xff] (!%p162_p2)  ;;  %v296_v37 = vld [vmem:[%s832_s2 + $0x50] sm:$0xff] (!%p162_p2) }
   0xd   : > { %584 = vmatprep.subr.bf16.mxu0 %v647_v3  ;;  %v207_v35 = vld [vmem:[%s831_s1 + $0x68] sm:$0xff]  ;;  %v615_v36 = vpack.c.bf16 %v295_v32, %v294_v31  ;;  %s836_s16 = smov (!%p185_p3, %s460_s16), 1  ;;  %v297_v38 = vld [vmem:[%s832_s2 + $0x58] sm:$0xff]  ;;  %v208_v40 = vld [vmem:[%s831_s1 + $0x70] sm:$0xff] }
   0xe   : > { %607 = vmatpush3.bf16.msra.mxu1 %v606_v18  ;;  %v597_v39 = vpack.c.bf16 %v207_v35, %v206_v34  ;;  %v209_v41 = vld [vmem:[%s831_s1 + $0x78] sm:$0xff]  ;;  %v618_v42 = vpack.c.bf16 %v297_v38, %v296_v37  ;;  %s465_s25 = sshll.u32 %s836_s16, 3  ;;  %v298_v43 = vld [vmem:[%s832_s2 + $0x60] sm:$0xff]  ;;  %v299_v44 = vld [vmem:[%s832_s2 + $0x68] sm:$0xff] }
   0xf   : > { %608 = vmatprep.subr.bf16.mxu1 %v647_v3  ;;  %v600_v45 = vpack.c.bf16 %v209_v41, %v208_v40  ;;  %s188_s6 = scalar_lea.vmem %s830_s0, %s465_s25  ;;  %v621_v46 = vpack.c.bf16 %v299_v44, %v298_v43  ;;  %v300_v48 = vld [vmem:[%s832_s2 + $0x70] sm:$0xff]  ;;  %v301_v49 = vld [vmem:[%s832_s2 + $0x78] sm:$0xff]  ;;  %v467_v51 = vld [vmem:[%s833_s3] ss:$0 sm:$0xff]  ;;  %s192_s26 = scalar_lea.vmem %s834_s4, %s465_s25 }
  0x10   : > { %586 = vmatpush3.bf16.msra.mxu0 %v585_v15  ;;  %v193_v47 = vld [vmem:[%s188_s6] sm:$0xff]  ;;  %v624_v50 = vpack.c.bf16 %v301_v49, %v300_v48 }
  0x11   : > { %587 = vmatprep.subr.bf16.mxu0 %v647_v3  ;;  %v468_v56 = vld [vmem:[%s833_s3 + $0x1] ss:$0 sm:$0xff]  ;;  %v469_v62 = vld [vmem:[%s833_s3 + $0x4] ss:$0 sm:$0xff]  ;;  %v470_v6 = vld [vmem:[%s833_s3 + $0x2] ss:$0 sm:$0xff] }
  0x12   : > { %610 = vmatpush3.bf16.msra.mxu1 %v609_v24  ;;  %v471_v8 = vld [vmem:[%s833_s3 + $0x3] ss:$0 sm:$0xff] }
  0x13   : > { %611 = vmatprep.subr.bf16.mxu1 %v647_v3 }
  0x14   : > { %589 = vmatpush3.bf16.msra.mxu0 %v588_v21 }
  0x15   : > { %590 = vmatprep.subr.bf16.mxu0 %v647_v3 }
  0x16   : > { %613 = vmatpush3.bf16.msra.mxu1 %v612_v30 }
  0x17   : > { %614 = vmatprep.subr.bf16.mxu1 %v647_v3 }
  0x18   : > { %592 = vmatpush3.bf16.msra.mxu0 %v591_v27 }
  0x19   : > { %593 = vmatprep.subr.bf16.mxu0 %v647_v3 }
  0x1a   : > { %616 = vmatpush3.bf16.msra.mxu1 %v615_v36 }
  0x1b   : > { %617 = vmatprep.subr.bf16.mxu1 %v647_v3 }
  0x1c   : > { %595 = vmatpush3.bf16.msra.mxu0 %v594_v33 }
  0x1d   : > { %596 = vmatprep.subr.bf16.mxu0 %v647_v3 }
  0x1e   : > { %619 = vmatpush3.bf16.msra.mxu1 %v618_v42 }
  0x1f   : > { %620 = vmatprep.subr.bf16.mxu1 %v647_v3 }
  0x20   : > { %598 = vmatpush3.bf16.msra.mxu0 %v597_v39 }
  0x21   : > { %599 = vmatprep.subr.bf16.mxu0 %v647_v3 }
  0x22   : > { %622 = vmatpush3.bf16.msra.mxu1 %v621_v46 }
  0x23   : > { %623 = vmatprep.subr.bf16.mxu1 %v647_v3 }
  0x24   : > { %601 = vmatpush3.bf16.msra.mxu0 %v600_v45 }
  0x26   : > { %625 = vmatpush3.bf16.msra.mxu1 %v624_v50 }
  0x27   : > { %541 = vmatmul.mubr.f32.vlgmr.msra.gmra.mrb[0].mxu0 %v193_v47 }
  0xfa   : > { %v281_v52 = vpop.f32.mrb[0].mxu0 }
  0xfb   : > { %v282_v53 = vadd.f32 %v467_v51, %v281_v52  ;;  %v542_v54 = vpop.f32.mrb[1].mxu0 }
  0xfd   : > { %v285_v55 = vmax.f32 %v282_v53, 0.0 }
  0xff   : > { %576 = vmatmul.mubr.f32.vlgmr.msra.gmra.mrb[0].mxu1 %v285_v55 }
 0x1d2   : > { %v373_v57 = vpop.f32.mrb[0].mxu1 }
 0x1d3   : > { %v374_v58 = vadd.f32 %v468_v56, %v373_v57  ;;  %v577_v59 = vpop.f32.mrb[1].mxu1 }
 0x1d5   : > { %377 = vadd.xlane.f32.xlu0 %v374_v58 }
 0x262   : > { %v378_v60 = vpop.xlane.xlu0 %377 }
 0x263   : > { %v379_v61 = vmul.f32 0.03125, %v378_v60 }
 0x265   : > { %v380_v63 = vsub.f32 %v374_v58, %v379_v61 }
 0x267   : > { %v386_v0 = vmul.f32 %v469_v62, %v380_v63 }
 0x269   : > { %v387_v1 = vmul.f32 %v386_v0, %v386_v0 }
 0x26b   : > { %388 = vadd.xlane.f32.xlu0 %v387_v1 }
 0x2f8   : > { %v389_v2 = vpop.xlane.xlu0 %388 }
 0x2f9   : > { %v390_v3 = vmul.f32 0.03125, %v389_v2 }
 0x2fb   : > { %v391_v4 = vadd.f32 1e-05, %v390_v3 }
 0x2fd   : > { %637 = vrsqrt.f32 %v391_v4 }
 0x307   : > { %v638_v5 = vpop.eup %637 }
 0x308   : > { %v393_v7 = vmul.f32 %v638_v5, %v386_v0 }
 0x30a   : > { %v399_v9 = vmul.f32 %v470_v6, %v393_v7 }
 0x30c   : > { %v405_v10 = vadd.f32 %v471_v8, %v399_v9 }
 0x30e   : > { %406 = vst [vmem:[%s192_s26] sm:$0xff] %v405_v10 }
 0x30f PF: > { %s14_s15 = sadd.s32 1, %s645_s15  }
 0x310   : > { %p11_p4 = scmp.ge.s32.totalorder %s14_s15, 4  }
 0x312   :  { %13 = sbr.rel (!%p11_p4) target bundleno = 1 (0x1), region = 66 }

// kernel: ffn_compressed_forward.1
= control target key start
LH: loop header
LB: loop body
LE: loop exit
PB: predicated region body
PF: predicated region fallthrough
CT: control target
= control target key end

     0   :  { %s675_s15 = smov 0   ;;  %s830_s0 = inlined_call_operand.vmem [shape: f32[16,128], index: 0, kind: input, shape index: {}]   ;;  %s831_s1 = inlined_call_operand.vmem [shape: f32[128,128], index: 1, kind: input, shape index: {}]   ;;  %s832_s2 = inlined_call_operand.vmem [shape: f32[128,128], index: 2, kind: input, shape index: {}]   ;;  %s833_s3 = inlined_call_operand.vmem [shape: f32[8,128], index: 3, kind: input, shape index: {}]   ;;  %s834_s4 = inlined_call_operand.vmem [shape: f32[16,128], index: 4, kind: output, shape index: {}]  }
   0x1 LB: > { %s460_s16 = sadd.s32 4294967295, %s645_s15   ;;  %p464_p0 = scmp.ge.s32.totalorder %s645_s15, 1  ;;  %s645_s15 = sphi %s675_s15, %s14_s15  }
   0x2   : > { %p161_p1 = scmp.lt.s32.totalorder %s645_s15, 3 }
   0x4   : > { %p162_p2 = pnand %p464_p0, %p161_p1 }
   0x5   : > { %v194_v0 = vld [vmem:[%s831_s1] sm:$0xff] (!%p162_p2)  ;;  %v195_v1 = vld [vmem:[%s831_s1 + $0x8] sm:$0xff] (!%p162_p2)  ;;  %v196_v2 = vld [vmem:[%s831_s1 + $0x10] sm:$0xff] (!%p162_p2)  ;;  %v647_v3 = vmov (!%p162_p2), 0.0|0.0   ;;  %vm648_vm0 = vmmov (!%p162_p2), 0   ;;  %v649_v6 = vmov (!%p162_p2), 0.0  }
   0x6   : > { %165 = sbr.rel (%p162_p2) target bundleno = 783 (0x30f), region = 36  ;;  %578 = vmatprep.subr.bf16.mxu0 (!%p162_p2), %v647_v3  ;;  %v579_v4 = vpack.c.bf16 (!%p162_p2), %v195_v1, %v194_v0  ;;  %v197_v5 = vld [vmem:[%s831_s1 + $0x18] sm:$0xff] (!%p162_p2)  ;;  %540 = vmatprep.mubr.msk.f32.mxu0 (!%p162_p2), %vm648_vm0, %v649_v6  ;;  %v198_v8 = vld [vmem:[%s831_s1 + $0x20] sm:$0xff] (!%p162_p2)  ;;  %v199_v9 = vld [vmem:[%s831_s1 + $0x28] sm:$0xff] (!%p162_p2)  ;;  %p185_p3 = scmp.lt.s32.totalorder (!%p162_p2), %s460_s16, 1 }
   0x7   : > { %602 = vmatprep.subr.bf16.mxu1 (!%p162_p2), %v647_v3  ;;  %575 = vmatprep.mubr.msk.f32.mxu1 (!%p162_p2), %vm648_vm0, %v649_v6  ;;  %v582_v7 = vpack.c.bf16 (!%p162_p2), %v197_v5, %v196_v2  ;;  %v286_v10 = vld [vmem:[%s832_s2] sm:$0xff] (!%p162_p2)  ;;  %v287_v11 = vld [vmem:[%s832_s2 + $0x8] sm:$0xff] (!%p162_p2)  ;;  %v288_v13 = vld [vmem:[%s832_s2 + $0x10] sm:$0xff] (!%p162_p2)  ;;  %v585_v15 = vpack.c.bf16 (!%p162_p2), %v199_v9, %v198_v8 }
   0x8   : > { %580 = vmatpush3.bf16.msra.mxu0 (!%p162_p2), %v579_v4  ;;  %v603_v12 = vpack.c.bf16 (!%p162_p2), %v287_v11, %v286_v10  ;;  %v289_v14 = vld [vmem:[%s832_s2 + $0x18] sm:$0xff] (!%p162_p2)  ;;  %v200_v16 = vld [vmem:[%s831_s1 + $0x30] sm:$0xff] (!%p162_p2)  ;;  %v290_v19 = vld [vmem:[%s832_s2 + $0x20] sm:$0xff] (!%p162_p2) }
   0x9   : > { %581 = vmatprep.subr.bf16.mxu0 (!%p162_p2), %v647_v3  ;;  %v201_v17 = vld [vmem:[%s831_s1 + $0x38] sm:$0xff] (!%p162_p2)  ;;  %v606_v18 = vpack.c.bf16 (!%p162_p2), %v289_v14, %v288_v13  ;;  %v291_v20 = vld [vmem:[%s832_s2 + $0x28] sm:$0xff] (!%p162_p2)  ;;  %v202_v22 = vld [vmem:[%s831_s1 + $0x40] sm:$0xff] (!%p162_p2) }
   0xa   : > { %604 = vmatpush3.bf16.msra.mxu1 (!%p162_p2), %v603_v12  ;;  %v588_v21 = vpack.c.bf16 (!%p162_p2), %v201_v17, %v200_v16  ;;  %v203_v23 = vld [vmem:[%s831_s1 + $0x48] sm:$0xff] (!%p162_p2)  ;;  %v609_v24 = vpack.c.bf16 (!%p162_p2), %v291_v20, %v290_v19  ;;  %v292_v25 = vld [vmem:[%s832_s2 + $0x30] sm:$0xff] (!%p162_p2)  ;;  %v293_v26 = vld [vmem:[%s832_s2 + $0x38] sm:$0xff] (!%p162_p2) }
   0xb   : > { %605 = vmatprep.subr.bf16.mxu1 (!%p162_p2), %v647_v3  ;;  %v591_v27 = vpack.c.bf16 (!%p162_p2), %v203_v23, %v202_v22  ;;  %v204_v28 = vld [vmem:[%s831_s1 + $0x50] sm:$0xff] (!%p162_p2)  ;;  %v205_v29 = vld [vmem:[%s831_s1 + $0x58] sm:$0xff] (!%p162_p2)  ;;  %v612_v30 = vpack.c.bf16 (!%p162_p2), %v293_v26, %v292_v25  ;;  %v294_v31 = vld [vmem:[%s832_s2 + $0x40] sm:$0xff] (!%p162_p2) }
   0xc   : > { %583 = vmatpush3.bf16.msra.mxu0 (!%p162_p2), %v582_v7  ;;  %v295_v32 = vld [vmem:[%s832_s2 + $0x48] sm:$0xff] (!%p162_p2)  ;;  %v594_v33 = vpack.c.bf16 (!%p162_p2), %v205_v29, %v204_v28  ;;  %v206_v34 = vld [vmem:[%s831_s1 + $0x60] sm:$0xff] (!%p162_p2)  ;;  %v296_v37 = vld [vmem:[%s832_s2 + $0x50] sm:$0xff] (!%p162_p2) }
   0xd   : > { %584 = vmatprep.subr.bf16.mxu0 %v647_v3  ;;  %v207_v35 = vld [vmem:[%s831_s1 + $0x68] sm:$0xff]  ;;  %v615_v36 = vpack.c.bf16 %v295_v32, %v294_v31  ;;  %s836_s16 = smov (!%p185_p3, %s460_s16), 1  ;;  %v297_v38 = vld [vmem:[%s832_s2 + $0x58] sm:$0xff]  ;;  %v208_v40 = vld [vmem:[%s831_s1 + $0x70] sm:$0xff] }
   0xe   : > { %607 = vmatpush3.bf16.msra.mxu1 %v606_v18  ;;  %v597_v39 = vpack.c.bf16 %v207_v35, %v206_v34  ;;  %v209_v41 = vld [vmem:[%s831_s1 + $0x78] sm:$0xff]  ;;  %v618_v42 = vpack.c.bf16 %v297_v38, %v296_v37  ;;  %s465_s25 = sshll.u32 %s836_s16, 3  ;;  %v298_v43 = vld [vmem:[%s832_s2 + $0x60] sm:$0xff]  ;;  %v299_v44 = vld [vmem:[%s832_s2 + $0x68] sm:$0xff] }
   0xf   : > { %608 = vmatprep.subr.bf16.mxu1 %v647_v3  ;;  %v600_v45 = vpack.c.bf16 %v209_v41, %v208_v40  ;;  %s188_s6 = scalar_lea.vmem %s830_s0, %s465_s25  ;;  %v621_v46 = vpack.c.bf16 %v299_v44, %v298_v43  ;;  %v300_v48 = vld [vmem:[%s832_s2 + $0x70] sm:$0xff]  ;;  %v301_v49 = vld [vmem:[%s832_s2 + $0x78] sm:$0xff]  ;;  %v467_v51 = vld [vmem:[%s833_s3] ss:$0 sm:$0xff]  ;;  %s192_s26 = scalar_lea.vmem %s834_s4, %s465_s25 }
  0x10   : > { %586 = vmatpush3.bf16.msra.mxu0 %v585_v15  ;;  %v193_v47 = vld [vmem:[%s188_s6] sm:$0xff]  ;;  %v624_v50 = vpack.c.bf16 %v301_v49, %v300_v48 }
  0x11   : > { %587 = vmatprep.subr.bf16.mxu0 %v647_v3  ;;  %v468_v56 = vld [vmem:[%s833_s3 + $0x1] ss:$0 sm:$0xff]  ;;  %v469_v62 = vld [vmem:[%s833_s3 + $0x4] ss:$0 sm:$0xff]  ;;  %v470_v6 = vld [vmem:[%s833_s3 + $0x2] ss:$0 sm:$0xff] }
  0x12   : > { %610 = vmatpush3.bf16.msra.mxu1 %v609_v24  ;;  %v471_v8 = vld [vmem:[%s833_s3 + $0x3] ss:$0 sm:$0xff] }
  0x13   : > { %611 = vmatprep.subr.bf16.mxu1 %v647_v3 }
  0x14   : > { %589 = vmatpush3.bf16.msra.mxu0 %v588_v21 }
  0x15   : > { %590 = vmatprep.subr.bf16.mxu0 %v647_v3 }
  0x16   : > { %613 = vmatpush3.bf16.msra.mxu1 %v612_v30 }
  0x17   : > { %614 = vmatprep.subr.bf16.mxu1 %v647_v3 }
  0x18   : > { %592 = vmatpush3.bf16.msra.mxu0 %v591_v27 }
  0x19   : > { %593 = vmatprep.subr.bf16.mxu0 %v647_v3 }
  0x1a   : > { %616 = vmatpush3.bf16.msra.mxu1 %v615_v36 }
  0x1b   : > { %617 = vmatprep.subr.bf16.mxu1 %v647_v3 }
  0x1c   : > { %595 = vmatpush3.bf16.msra.mxu0 %v594_v33 }
  0x1d   : > { %596 = vmatprep.subr.bf16.mxu0 %v647_v3 }
  0x1e   : > { %619 = vmatpush3.bf16.msra.mxu1 %v618_v42 }
  0x1f   : > { %620 = vmatprep.subr.bf16.mxu1 %v647_v3 }
  0x20   : > { %598 = vmatpush3.bf16.msra.mxu0 %v597_v39 }
  0x21   : > { %599 = vmatprep.subr.bf16.mxu0 %v647_v3 }
  0x22   : > { %622 = vmatpush3.bf16.msra.mxu1 %v621_v46 }
  0x23   : > { %623 = vmatprep.subr.bf16.mxu1 %v647_v3 }
  0x24   : > { %601 = vmatpush3.bf16.msra.mxu0 %v600_v45 }
  0x26   : > { %625 = vmatpush3.bf16.msra.mxu1 %v624_v50 }
  0x27   : > { %541 = vmatmul.mubr.f32.vlgmr.msra.gmra.mrb[0].mxu0 %v193_v47 }
  0xfa   : > { %v281_v52 = vpop.f32.mrb[0].mxu0 }
  0xfb   : > { %v282_v53 = vadd.f32 %v467_v51, %v281_v52  ;;  %v542_v54 = vpop.f32.mrb[1].mxu0 }
  0xfd   : > { %v285_v55 = vmax.f32 %v282_v53, 0.0 }
  0xff   : > { %576 = vmatmul.mubr.f32.vlgmr.msra.gmra.mrb[0].mxu1 %v285_v55 }
 0x1d2   : > { %v373_v57 = vpop.f32.mrb[0].mxu1 }
 0x1d3   : > { %v374_v58 = vadd.f32 %v468_v56, %v373_v57  ;;  %v577_v59 = vpop.f32.mrb[1].mxu1 }
 0x1d5   : > { %377 = vadd.xlane.f32.xlu0 %v374_v58 }
 0x262   : > { %v378_v60 = vpop.xlane.xlu0 %377 }
 0x263   : > { %v379_v61 = vmul.f32 0.03125, %v378_v60 }
 0x265   : > { %v380_v63 = vsub.f32 %v374_v58, %v379_v61 }
 0x267   : > { %v386_v0 = vmul.f32 %v469_v62, %v380_v63 }
 0x269   : > { %v387_v1 = vmul.f32 %v386_v0, %v386_v0 }
 0x26b   : > { %388 = vadd.xlane.f32.xlu0 %v387_v1 }
 0x2f8   : > { %v389_v2 = vpop.xlane.xlu0 %388 }
 0x2f9   : > { %v390_v3 = vmul.f32 0.03125, %v389_v2 }
 0x2fb   : > { %v391_v4 = vadd.f32 1e-05, %v390_v3 }
 0x2fd   : > { %637 = vrsqrt.f32 %v391_v4 }
 0x307   : > { %v638_v5 = vpop.eup %637 }
 0x308   : > { %v393_v7 = vmul.f32 %v638_v5, %v386_v0 }
 0x30a   : > { %v399_v9 = vmul.f32 %v470_v6, %v393_v7 }
 0x30c   : > { %v405_v10 = vadd.f32 %v471_v8, %v399_v9 }
 0x30e   : > { %406 = vst [vmem:[%s192_s26] sm:$0xff] %v405_v10 }
 0x30f PF: > { %s14_s15 = sadd.s32 1, %s645_s15  }
 0x310   : > { %p11_p4 = scmp.ge.s32.totalorder %s14_s15, 4  }
 0x312   :  { %13 = sbr.rel (!%p11_p4) target bundleno = 1 (0x1), region = 66 }

</bundles_post_ra>
